<compile_context>
chip_gen: v7x
topology: tpu7x:2x2x1
jax: 0.10.0
libtpu: 0.0.40
codegen_flags: <defaults>
</compile_context>

<pallas_src>
import jax
import jax.numpy as jnp
from jax.experimental import pallas as pl
from jax.experimental.pallas import tpu as pltpu


def _round_up(n, m):
    return ((n + m - 1) // m) * m


# --------------------------------------------------------------------------
# Kernel
# --------------------------------------------------------------------------
def iwpa_kernel(x_ref, feat_ref, pool_ref, w1_ref, b1_ref, w2_ref, b2_ref,
                w3_ref, b3_ref, gate_ref, out_ref):
    """One batch tile: pool -> 3x 1x1 conv -> part attention -> gate -> +feat."""
    bt, c, hw = x_ref.shape            # c == inter == padded channel count
    part = pool_ref.shape[1]
    inter = w1_ref.shape[1]
    inv_hpw = 1.0 / (hw // part)       # exact f32 scale applied after the 0/1 matmul

    # adaptive_avg_pool2d(x, (part, 1)) as one flat MXU matmul with large M.
    x2d = x_ref[...].reshape(bt * c, hw)                                   # bf16
    pooled = jnp.dot(x2d, pool_ref[...],
                     preferred_element_type=jnp.float32)                   # (bt*C, part) f32
    pf = jnp.swapaxes(pooled.reshape(bt, c, part), 1, 2) * inv_hpw         # (bt, part, C) f32
    pf2d = pf.reshape(bt * part, c).astype(x2d.dtype)                      # (bt*part, C) bf16

    # The three 1x1 convs as flat (bt*part, C) @ (C, inter) matmuls
    # (weights pre-transposed in the wrapper; no broadcasted weight copies).
    def fc(w_ref, b_ref):
        h = jnp.dot(pf2d, w_ref[...], preferred_element_type=jnp.float32)  # (bt*part, inter)
        return h + b_ref[...]                                              # f32 bias add

    pf1 = fc(w1_ref, b1_ref)
    pf2 = fc(w2_ref, b2_ref)
    pf3 = fc(w3_ref, b3_ref)

    # cpa_att = softmax(part_feat1 @ part_feat2, dim=-1): MXU inputs in bf16
    # (halves vreg pressure), softmax kept in f32.
    pf1b = pf1.reshape(bt, part, inter).astype(jnp.bfloat16)
    pf2b = pf2.reshape(bt, part, inter).astype(jnp.bfloat16)
    att = jnp.einsum("bpi,bqi->bpq", pf1b, pf2b,
                     preferred_element_type=jnp.float32)                   # (bt, part, part)
    att = att - jnp.max(att, axis=-1, keepdims=True)
    e = jnp.exp(att)
    att = e * pl.reciprocal(jnp.sum(e, axis=-1, keepdims=True), approx=True)

    # weight_part_feat[b,i] = sum_q (sum_p gate[p]*att[b,p,q]) * pf3[b,q,i]
    # (gate already softmaxed in the wrapper; `refined` never materialised).
    g = gate_ref[...]                                                      # (1, part) f32
    g_att = jnp.sum(att * g[:, :, None], axis=1)                           # (bt, part)
    pf3b = pf3.reshape(bt, part, inter)                                    # f32
    wpf = jnp.sum(pf3b * g_att[:, :, None], axis=1)                        # (bt, inter)

    out_ref[...] = wpf + feat_ref[...]                                     # f32, lane-dense store


# --------------------------------------------------------------------------
# VMEM sizing helpers
# --------------------------------------------------------------------------
def _vmem_capacity_bytes():
    try:
        cap = int(pltpu.get_tpu_info().vmem_capacity_bytes)
        return min(max(cap, 32 << 20), 256 << 20)
    except Exception:
        return 64 << 20   # conservative default: v7x has 64 MiB per TensorCore


def _vmem_model(c_pad, hw):
    """(resident constant bytes, per-sample working-set bytes) inside the kernel."""
    bf16 = 2
    const_bytes = (3 * c_pad * c_pad * bf16            # fc1/2/3 weights (single-buffered)
                   + _round_up(hw, 16) * 128 * bf16    # pooling indicator (lane padded)
                   + 8 * c_pad * 4)                    # biases + gate
    per_sample = (2 * c_pad * hw * bf16                # x tile, 2 pipeline buffers
                  + c_pad * 128 * 4                    # pooled (bt*C, part): lane-padded f32
                  + 10 * 8 * c_pad * 4                 # pf1/2/3 (+bf16 copies), sublane padded
                  + 4 * c_pad * 4)                     # feat + out tiles
    return const_bytes, per_sample


def _pick_b_tile(b, c_pad, hw, vmem_budget):
    const_bytes, per_sample = _vmem_model(c_pad, hw)
    avail = max(vmem_budget - const_bytes, per_sample)
    # Cap at 256: b_tile*part = 768 already fills the 256-row MXU M dimension.
    max_tile = max(8, min(avail // per_sample, 256))
    if b <= max_tile:
        # Whole batch fits in one tile: split into two grid steps when the
        # batch allows, so both v7x TensorCores get work ("parallel" axis).
        half = _round_up(b, 16) // 2
        return half if b > half else b
    n_tiles = -(-b // max_tile)
    tile = _round_up(-(-b // n_tiles), 8)
    if tile > max_tile:
        tile = max(8, (max_tile // 8) * 8)
    return tile


# --------------------------------------------------------------------------
# Wrapper
# --------------------------------------------------------------------------
def iwpa_part_attention(x, feat, params, *, t=1, part=3):
    """Pallas forward of the IWPA block up to (excluding) the BN bottleneck.
    Returns weight_part_feat + feat, shape (b, C), f32."""
    bt_total, c, h, w = x.shape
    assert t == 1, "reference .view(b, inter, part) only type-checks for t == 1"
    # TODO(synk): t > 1 would need the (b, t, c, part) handling of the reference.
    b = bt_total // t
    assert h % part == 0, "adaptive pooling implemented for h % part == 0"
    hw = h * w
    hpw = (h // part) * w
    inter = params["w1"].shape[0]
    assert inter == c, "inter_channels must equal in_channels for the residual add"
    assert feat.shape == (b, c)

    # Pad channels to a multiple of 128: lane-dense FC matmuls and an unmasked
    # output store. Padded channels stay exactly zero end-to-end (zero weight
    # rows/cols, zero bias, zero feat) and are sliced off below.
    c_pad = _round_up(c, 128)

    cap = _vmem_capacity_bytes()
    b_tile = _pick_b_tile(b, c_pad, hw, vmem_budget=cap // 2)
    b_pad = _round_up(b, b_tile)

    x_flat = x.reshape(b, c, hw).astype(jnp.bfloat16)      # NCHW row-major flatten
    x_flat = jnp.pad(x_flat, ((0, b_pad - b), (0, c_pad - c), (0, 0)))
    feat_f = jnp.pad(feat.astype(jnp.float32), ((0, b_pad - b), (0, c_pad - c)))
    # TODO(synk): optionally pad HW to a multiple of 128 as well; skipped since it
    # inflates the dominant x HBM traffic when HW is far from a 128 multiple.

    # Pooling indicator (HW, part): exact 0/1 in bf16; 1/hpw applied in-kernel in f32.
    bins = jnp.arange(hw, dtype=jnp.int32) // hpw
    pool_ind = (bins[:, None] == jnp.arange(part, dtype=jnp.int32)[None, :]).astype(jnp.bfloat16)

    def prep_w(wm):   # conv weight (inter, C) -> padded, transposed (C_pad, C_pad) bf16
        wt = jnp.pad(wm.astype(jnp.float32).T, ((0, c_pad - c), (0, c_pad - c)))
        return wt.astype(jnp.bfloat16)

    def prep_b(bv):   # (inter,) -> (1, C_pad) f32
        return jnp.pad(bv.astype(jnp.float32).reshape(1, inter), ((0, 0), (0, c_pad - c)))

    w1t, w2t, w3t = prep_w(params["w1"]), prep_w(params["w2"]), prep_w(params["w3"])
    b1, b2, b3 = prep_b(params["b1"]), prep_b(params["b2"]), prep_b(params["b3"])
    # softmax(gate) is batch-invariant -> hoisted out of the kernel.
    gate_soft = jax.nn.softmax(params["gate"].astype(jnp.float32).reshape(1, part), axis=-1)

    # Constant-index operands: fetched once, single-buffered (frees VMEM for x).
    def const_spec(shape):
        index_map = lambda i, _z=(0,) * len(shape): _z
        try:
            return pl.BlockSpec(shape, index_map, pipeline_mode=pl.Buffered(1))
        except (AttributeError, TypeError):
            return pl.BlockSpec(shape, index_map)   # fallback: default double-buffering

    const_bytes, per_sample = _vmem_model(c_pad, hw)
    est = 2 * const_bytes + b_tile * per_sample     # 2x consts: safe if Buffered(1) unavailable
    vmem_limit = int(min(max(32 << 20, est * 5 // 4), int(0.9 * cap)))

    flops = (2 * b_pad * c_pad * hw * part                 # pooling matmul
             + 3 * 2 * b_pad * part * c_pad * c_pad        # fc1/2/3
             + 2 * b_pad * part * part * c_pad             # attention scores
             + 4 * b_pad * part * c_pad)                   # gating + residual
    bytes_accessed = (x_flat.size * 2 + feat_f.size * 4 + 3 * c_pad * c_pad * 2
                      + hw * part * 2 + 3 * c_pad * 4 + b_pad * c_pad * 4)
    cost = pl.CostEstimate(flops=int(flops),
                           transcendentals=int(b_pad * part * part),
                           bytes_accessed=int(bytes_accessed))

    grid = (b_pad // b_tile,)
    out = pl.pallas_call(
        iwpa_kernel,
        out_shape=jax.ShapeDtypeStruct((b_pad, c_pad), jnp.float32),
        grid=grid,
        in_specs=[
            pl.BlockSpec((b_tile, c_pad, hw), lambda i: (i, 0, 0)),   # x batch tile (bf16)
            pl.BlockSpec((b_tile, c_pad), lambda i: (i, 0)),          # feat tile (f32)
            const_spec((hw, part)),                                   # pooling indicator
            const_spec((c_pad, c_pad)), const_spec((1, c_pad)),       # fc1 W^T, bias
            const_spec((c_pad, c_pad)), const_spec((1, c_pad)),       # fc2 W^T, bias
            const_spec((c_pad, c_pad)), const_spec((1, c_pad)),       # fc3 W^T, bias
            const_spec((1, part)),                                    # softmax(gate)
        ],
        out_specs=pl.BlockSpec((b_tile, c_pad), lambda i: (i, 0)),
        compiler_params=pltpu.CompilerParams(
            dimension_semantics=("parallel",),
            vmem_limit_bytes=vmem_limit),
        cost_estimate=cost,
    )(x_flat, feat_f, pool_ind, w1t, b1, w2t, b2, w3t, b3, gate_soft)

    return out[:b, :c]


def iwpa_forward(x, feat, params, *, t=1, part=3):
    out = iwpa_part_attention(x, feat, params, t=t, part=part)
    # bottleneck: BatchNorm1d(in_channels) in training mode (batch statistics,
    # biased variance, eps=1e-5), bias frozen at zero.  Cross-batch statistics
    # -> plain JAX after the per-tile kernel (padded rows already sliced off).
    mean = jnp.mean(out, axis=0, keepdims=True)
    var = jnp.mean((out - mean) ** 2, axis=0, keepdims=True)
    return (out - mean) * jax.lax.rsqrt(var + 1e-5) * params["bn_gamma"]


# --------------------------------------------------------------------------
# Pure-JAX f32 reference (pre-bottleneck) for tolerance checking
# --------------------------------------------------------------------------
def iwpa_part_attention_ref(x, feat, params, *, t=1, part=3):
    bt, c, h, w = x.shape
    b = bt // t
    pooled = x.reshape(b, c, part, (h // part) * w).mean(axis=-1)          # (b, c, part)

    def fc(wm, bv):
        return jnp.einsum("bcp,oc->bpo", pooled, wm) + bv[None, None, :]

    pf1 = fc(params["w1"], params["b1"])
    pf2 = fc(params["w2"], params["b2"])
    pf3 = fc(params["w3"], params["b3"])
    att = jax.nn.softmax(jnp.einsum("bpi,bqi->bpq", pf1, pf2), axis=-1)
    refined = jnp.einsum("bpq,bqi->bpi", att, pf3)
    gate = jax.nn.softmax(params["gate"], axis=-1)
    wpf = jnp.einsum("bpi,p->bi", refined, gate)
    return wpf + feat


def make_params(key, in_channels, part):
    inter = in_channels  # inter_channels / out_channels default to in_channels
    ks = jax.random.split(key, 8)
    bound = 1.0 / (in_channels ** 0.5)
    return {
        "w1": jax.random.uniform(ks[0], (inter, in_channels), jnp.float32, -bound, bound),
        "b1": jax.random.uniform(ks[1], (inter,), jnp.float32, -bound, bound),
        "w2": jax.random.uniform(ks[2], (inter, in_channels), jnp.float32, -bound, bound),
        "b2": jax.random.uniform(ks[3], (inter,), jnp.float32, -bound, bound),
        "w3": jax.random.uniform(ks[4], (inter, in_channels), jnp.float32, -bound, bound),
        "b3": jax.random.uniform(ks[5], (inter,), jnp.float32, -bound, bound),
        "gate": jnp.full((part,), 1.0 / part, jnp.float32),              # nn.init.constant_
        "bn_gamma": 1.0 + 0.01 * jax.random.normal(ks[6], (1, in_channels), jnp.float32),
    }


if __name__ == "__main__":
    B, T, C, H, W = 2, 1, 32, 6, 8    # bt = B*T; H divisible by part
    PART = 3

    key = jax.random.PRNGKey(0)
    kx, kf, kp = jax.random.split(key, 3)
    x = jax.random.normal(kx, (B * T, C, H, W), jnp.float32)
    feat = jax.random.normal(kf, (B, C), jnp.float32)
    params = make_params(kp, C, PART)

    # tolerance check of the Pallas part-attention block against a pure-JAX f32 ref
    pre_bn = iwpa_part_attention(x, feat, params, t=T, part=PART)
    jax.block_until_ready(pre_bn)
    ref = iwpa_part_attention_ref(x, feat, params, t=T, part=PART)
    assert pre_bn.shape == (B, C)
    max_err = float(jnp.max(jnp.abs(pre_bn - ref)))
    assert jnp.allclose(pre_bn, ref, rtol=3e-2, atol=3e-2), f"max abs err {max_err}"

    # full forward (kernel + BatchNorm1d epilogue)
    out = iwpa_forward(x, feat, params, t=T, part=PART)
    jax.block_until_ready(out)
    assert out.shape == (B, C) and out.dtype == jnp.float32
    assert bool(jnp.all(jnp.isfinite(out)))
    print("KERNEL_OK")
</pallas_src>

<mosaic_0001>
module attributes {stable_mosaic.version = 11 : i64} {
  func.func @iwpa_kernel(%arg0: i32, %arg1: memref<2x128x48xbf16, #tpu.memory_space<vmem>>, %arg2: memref<2x128xf32, #tpu.memory_space<vmem>>, %arg3: memref<48x3xbf16, #tpu.memory_space<vmem>>, %arg4: memref<128x128xbf16, #tpu.memory_space<vmem>>, %arg5: memref<1x128xf32, #tpu.memory_space<vmem>>, %arg6: memref<128x128xbf16, #tpu.memory_space<vmem>>, %arg7: memref<1x128xf32, #tpu.memory_space<vmem>>, %arg8: memref<128x128xbf16, #tpu.memory_space<vmem>>, %arg9: memref<1x128xf32, #tpu.memory_space<vmem>>, %arg10: memref<1x3xf32, #tpu.memory_space<vmem>>, %arg11: memref<2x128xf32, #tpu.memory_space<vmem>>) attributes {dimension_semantics = [#tpu.dimension_semantics<parallel>], iteration_bounds = array<i64: 1>, scalar_prefetch = 0 : i64, scratch_operands = 0 : i64, tpu.core_type = #tpu.core_type<tc>, window_params = [{transform_indices = @transform_0, window_bounds = array<i64: 2, 128, 48>}, {transform_indices = @transform_1, window_bounds = array<i64: 2, 128>}, {pipeline_mode = #tpu.pipeline_mode<synchronous>, transform_indices = @transform_2, window_bounds = array<i64: 48, 3>}, {pipeline_mode = #tpu.pipeline_mode<synchronous>, transform_indices = @transform_3, window_bounds = array<i64: 128, 128>}, {pipeline_mode = #tpu.pipeline_mode<synchronous>, transform_indices = @transform_4, window_bounds = array<i64: 1, 128>}, {pipeline_mode = #tpu.pipeline_mode<synchronous>, transform_indices = @transform_5, window_bounds = array<i64: 128, 128>}, {pipeline_mode = #tpu.pipeline_mode<synchronous>, transform_indices = @transform_6, window_bounds = array<i64: 1, 128>}, {pipeline_mode = #tpu.pipeline_mode<synchronous>, transform_indices = @transform_7, window_bounds = array<i64: 128, 128>}, {pipeline_mode = #tpu.pipeline_mode<synchronous>, transform_indices = @transform_8, window_bounds = array<i64: 1, 128>}, {pipeline_mode = #tpu.pipeline_mode<synchronous>, transform_indices = @transform_9, window_bounds = array<i64: 1, 3>}, {transform_indices = @transform_10, window_bounds = array<i64: 2, 128>}]} {
    %c0 = arith.constant 0 : index
    %c0_0 = arith.constant 0 : index
    %c0_1 = arith.constant 0 : index
    %0 = vector.load %arg1[%c0, %c0_0, %c0_1] : memref<2x128x48xbf16, #tpu.memory_space<vmem>>, vector<2x128x48xbf16>
    %1 = vector.shape_cast %0 : vector<2x128x48xbf16> to vector<256x48xbf16>
    %c0_2 = arith.constant 0 : index
    %c0_3 = arith.constant 0 : index
    %2 = vector.load %arg3[%c0_2, %c0_3] : memref<48x3xbf16, #tpu.memory_space<vmem>>, vector<48x3xbf16>
    %cst = arith.constant dense<0.000000e+00> : vector<256x3xf32>
    %3 = tpu.matmul %1, %2, %cst {dimension_numbers = #tpu.dot_dimension_numbers<[1], [0], [0], [1], [0, 0, 1, 1], [], []>} : vector<256x48xbf16>, vector<48x3xbf16>, vector<256x3xf32> -> vector<256x3xf32>
    %4 = vector.shape_cast %3 : vector<256x3xf32> to vector<2x128x3xf32>
    %5 = tpu.transpose %4, [0, 2, 1] : vector<2x128x3xf32> -> vector<2x3x128xf32>
    %cst_4 = arith.constant 6.250000e-02 : f32
    %6 = vector.broadcast %cst_4 : f32 to vector<2x3x128xf32>
    %7 = arith.mulf %5, %6 : vector<2x3x128xf32>
    %8 = vector.shape_cast %7 : vector<2x3x128xf32> to vector<6x128xf32>
    %9 = arith.truncf %8 : vector<6x128xf32> to vector<6x128xbf16>
    %c0_5 = arith.constant 0 : index
    %c0_6 = arith.constant 0 : index
    %10 = vector.load %arg4[%c0_5, %c0_6] : memref<128x128xbf16, #tpu.memory_space<vmem>>, vector<128x128xbf16>
    %cst_7 = arith.constant dense<0.000000e+00> : vector<6x128xf32>
    %11 = tpu.matmul %9, %10, %cst_7 {dimension_numbers = #tpu.dot_dimension_numbers<[1], [0], [0], [1], [0, 0, 1, 1], [], []>} : vector<6x128xbf16>, vector<128x128xbf16>, vector<6x128xf32> -> vector<6x128xf32>
    %c0_8 = arith.constant 0 : index
    %c0_9 = arith.constant 0 : index
    %12 = vector.load %arg5[%c0_8, %c0_9] : memref<1x128xf32, #tpu.memory_space<vmem>>, vector<1x128xf32>
    %13 = vector.broadcast %12 : vector<1x128xf32> to vector<6x128xf32>
    %14 = arith.addf %11, %13 : vector<6x128xf32>
    %c0_10 = arith.constant 0 : index
    %c0_11 = arith.constant 0 : index
    %15 = vector.load %arg6[%c0_10, %c0_11] : memref<128x128xbf16, #tpu.memory_space<vmem>>, vector<128x128xbf16>
    %cst_12 = arith.constant dense<0.000000e+00> : vector<6x128xf32>
    %16 = tpu.matmul %9, %15, %cst_12 {dimension_numbers = #tpu.dot_dimension_numbers<[1], [0], [0], [1], [0, 0, 1, 1], [], []>} : vector<6x128xbf16>, vector<128x128xbf16>, vector<6x128xf32> -> vector<6x128xf32>
    %c0_13 = arith.constant 0 : index
    %c0_14 = arith.constant 0 : index
    %17 = vector.load %arg7[%c0_13, %c0_14] : memref<1x128xf32, #tpu.memory_space<vmem>>, vector<1x128xf32>
    %18 = vector.broadcast %17 : vector<1x128xf32> to vector<6x128xf32>
    %19 = arith.addf %16, %18 : vector<6x128xf32>
    %c0_15 = arith.constant 0 : index
    %c0_16 = arith.constant 0 : index
    %20 = vector.load %arg8[%c0_15, %c0_16] : memref<128x128xbf16, #tpu.memory_space<vmem>>, vector<128x128xbf16>
    %cst_17 = arith.constant dense<0.000000e+00> : vector<6x128xf32>
    %21 = tpu.matmul %9, %20, %cst_17 {dimension_numbers = #tpu.dot_dimension_numbers<[1], [0], [0], [1], [0, 0, 1, 1], [], []>} : vector<6x128xbf16>, vector<128x128xbf16>, vector<6x128xf32> -> vector<6x128xf32>
    %c0_18 = arith.constant 0 : index
    %c0_19 = arith.constant 0 : index
    %22 = vector.load %arg9[%c0_18, %c0_19] : memref<1x128xf32, #tpu.memory_space<vmem>>, vector<1x128xf32>
    %23 = vector.broadcast %22 : vector<1x128xf32> to vector<6x128xf32>
    %24 = arith.addf %21, %23 : vector<6x128xf32>
    %25 = vector.shape_cast %14 : vector<6x128xf32> to vector<2x3x128xf32>
    %26 = arith.truncf %25 : vector<2x3x128xf32> to vector<2x3x128xbf16>
    %27 = vector.shape_cast %19 : vector<6x128xf32> to vector<2x3x128xf32>
    %28 = arith.truncf %27 : vector<2x3x128xf32> to vector<2x3x128xbf16>
    "tpu.trace_start"() <{level = 10 : i32, message = "bpi,bqi->bpq"}> : () -> ()
    %cst_20 = arith.constant dense<0.000000e+00> : vector<2x3x3xf32>
    %29 = tpu.matmul %26, %28, %cst_20 {dimension_numbers = #tpu.dot_dimension_numbers<[2], [2], [1], [1], [0, 0, 0, 1, 1, 1], [0], [0]>} : vector<2x3x128xbf16>, vector<2x3x128xbf16>, vector<2x3x3xf32> -> vector<2x3x3xf32>
    "tpu.trace_stop"() : () -> ()
    %cst_21 = arith.constant dense<0xFF800000> : vector<2x3xf32>
    %30 = vector.multi_reduction <maximumf>, %29, %cst_21 [2] : vector<2x3x3xf32> to vector<2x3xf32>
    %31 = vector.shape_cast %30 : vector<2x3xf32> to vector<2x3x1xf32>
    %32 = vector.broadcast %31 : vector<2x3x1xf32> to vector<2x3x3xf32>
    %33 = arith.subf %29, %32 : vector<2x3x3xf32>
    %34 = math.exp %33 : vector<2x3x3xf32>
    %cst_22 = arith.constant dense<0.000000e+00> : vector<2x3xf32>
    %35 = vector.multi_reduction <add>, %34, %cst_22 [2] : vector<2x3x3xf32> to vector<2x3xf32>
    %36 = vector.shape_cast %35 : vector<2x3xf32> to vector<2x3x1xf32>
    %37 = tpu.reciprocal %36 {approx = true} : vector<2x3x1xf32> -> vector<2x3x1xf32>
    %38 = vector.broadcast %37 : vector<2x3x1xf32> to vector<2x3x3xf32>
    %39 = arith.mulf %34, %38 : vector<2x3x3xf32>
    %c0_23 = arith.constant 0 : index
    %c0_24 = arith.constant 0 : index
    %40 = vector.load %arg10[%c0_23, %c0_24] : memref<1x3xf32, #tpu.memory_space<vmem>>, vector<1x3xf32>
    %41 = vector.shape_cast %40 : vector<1x3xf32> to vector<1x3x1xf32>
    %42 = vector.broadcast %41 : vector<1x3x1xf32> to vector<2x3x3xf32>
    %43 = arith.mulf %39, %42 : vector<2x3x3xf32>
    %cst_25 = arith.constant dense<0.000000e+00> : vector<2x3xf32>
    %44 = vector.multi_reduction <add>, %43, %cst_25 [1] : vector<2x3x3xf32> to vector<2x3xf32>
    %45 = vector.shape_cast %24 : vector<6x128xf32> to vector<2x3x128xf32>
    %46 = vector.shape_cast %44 : vector<2x3xf32> to vector<2x3x1xf32>
    %47 = vector.broadcast %46 : vector<2x3x1xf32> to vector<2x3x128xf32>
    %48 = arith.mulf %45, %47 : vector<2x3x128xf32>
    %cst_26 = arith.constant dense<0.000000e+00> : vector<2x128xf32>
    %49 = vector.multi_reduction <add>, %48, %cst_26 [1] : vector<2x3x128xf32> to vector<2x128xf32>
    %c0_27 = arith.constant 0 : index
    %c0_28 = arith.constant 0 : index
    %50 = vector.load %arg2[%c0_27, %c0_28] : memref<2x128xf32, #tpu.memory_space<vmem>>, vector<2x128xf32>
    %51 = arith.addf %49, %50 : vector<2x128xf32>
    %c0_29 = arith.constant 0 : index
    %c0_30 = arith.constant 0 : index
    %52 = vector.load %arg11[%c0_29, %c0_30] : memref<2x128xf32, #tpu.memory_space<vmem>>, vector<2x128xf32>
    tpu.vector_store %arg11[%c0_29, %c0_30], %51 {strides = array<i32>} : memref<2x128xf32, #tpu.memory_space<vmem>>, vector<2x128xf32>,
    return
  }
  func.func @transform_0(%arg0: i32) -> (i32, i32, i32) {
    %c0_i32 = arith.constant 0 : i32
    %c0_i32_0 = arith.constant 0 : i32
    %c0_i32_1 = arith.constant 0 : i32
    return %arg0, %c0_i32, %c0_i32_0 : i32, i32, i32
  }
  func.func @transform_1(%arg0: i32) -> (i32, i32) {
    %c0_i32 = arith.constant 0 : i32
    %c0_i32_0 = arith.constant 0 : i32
    return %arg0, %c0_i32 : i32, i32
  }
  func.func @transform_2(%arg0: i32) -> (i32, i32) {
    %c0_i32 = arith.constant 0 : i32
    %c0_i32_0 = arith.constant 0 : i32
    %c0_i32_1 = arith.constant 0 : i32
    return %c0_i32, %c0_i32_0 : i32, i32
  }
  func.func @transform_3(%arg0: i32) -> (i32, i32) {
    %c0_i32 = arith.constant 0 : i32
    %c0_i32_0 = arith.constant 0 : i32
    %c0_i32_1 = arith.constant 0 : i32
    return %c0_i32, %c0_i32_0 : i32, i32
  }
  func.func @transform_4(%arg0: i32) -> (i32, i32) {
    %c0_i32 = arith.constant 0 : i32
    %c0_i32_0 = arith.constant 0 : i32
    %c0_i32_1 = arith.constant 0 : i32
    return %c0_i32, %c0_i32_0 : i32, i32
  }
  func.func @transform_5(%arg0: i32) -> (i32, i32) {
    %c0_i32 = arith.constant 0 : i32
    %c0_i32_0 = arith.constant 0 : i32
    %c0_i32_1 = arith.constant 0 : i32
    return %c0_i32, %c0_i32_0 : i32, i32
  }
  func.func @transform_6(%arg0: i32) -> (i32, i32) {
    %c0_i32 = arith.constant 0 : i32
    %c0_i32_0 = arith.constant 0 : i32
    %c0_i32_1 = arith.constant 0 : i32
    return %c0_i32, %c0_i32_0 : i32, i32
  }
  func.func @transform_7(%arg0: i32) -> (i32, i32) {
    %c0_i32 = arith.constant 0 : i32
    %c0_i32_0 = arith.constant 0 : i32
    %c0_i32_1 = arith.constant 0 : i32
    return %c0_i32, %c0_i32_0 : i32, i32
  }
  func.func @transform_8(%arg0: i32) -> (i32, i32) {
    %c0_i32 = arith.constant 0 : i32
    %c0_i32_0 = arith.constant 0 : i32
    %c0_i32_1 = arith.constant 0 : i32
    return %c0_i32, %c0_i32_0 : i32, i32
  }
  func.func @transform_9(%arg0: i32) -> (i32, i32) {
    %c0_i32 = arith.constant 0 : i32
    %c0_i32_0 = arith.constant 0 : i32
    %c0_i32_1 = arith.constant 0 : i32
    return %c0_i32, %c0_i32_0 : i32, i32
  }
  func.func @transform_10(%arg0: i32) -> (i32, i32) {
    %c0_i32 = arith.constant 0 : i32
    %c0_i32_0 = arith.constant 0 : i32
    return %arg0, %c0_i32 : i32, i32
  }
}

</mosaic_0001>

<bundles_post_ra>
// kernel: tpu_custom_call.1
= control target key start
LH: loop header
LB: loop body
LE: loop exit
PB: predicated region body
PF: predicated region fallthrough
CT: control target
= control target key end

     0   :  { %vm173_vm0 = vcmask 392192   ;;  %s2023_s0 = inlined_call_operand.vmem [shape: bf16[2,128,48], index: 0, kind: input, shape index: {}]   ;;  %s2024_s1 = inlined_call_operand.vmem [shape: f32[2,128], index: 1, kind: input, shape index: {}]   ;;  %s2025_s2 = inlined_call_operand.vmem [shape: bf16[48,3], index: 2, kind: input, shape index: {}]   ;;  %s2026_s3 = inlined_call_operand.vmem [shape: bf16[128,128], index: 3, kind: input, shape index: {}]   ;;  %s2027_s4 = inlined_call_operand.vmem [shape: f32[1,128], index: 4, kind: input, shape index: {}]   ;;  %s2028_s5 = inlined_call_operand.vmem [shape: bf16[128,128], index: 5, kind: input, shape index: {}]   ;;  %s2029_s6 = inlined_call_operand.vmem [shape: f32[1,128], index: 6, kind: input, shape index: {}]   ;;  %s2030_s7 = inlined_call_operand.vmem [shape: bf16[128,128], index: 7, kind: input, shape index: {}]   ;;  %s2031_s8 = inlined_call_operand.vmem [shape: f32[1,128], index: 8, kind: input, shape index: {}]   ;;  %s2032_s9 = inlined_call_operand.vmem [shape: f32[1,3], index: 9, kind: input, shape index: {}]   ;;  %s2033_s10 = inlined_call_operand.hbm [shape: f32[2,128], index: 10, kind: output, shape index: {}]  }
   0x1   :  { %v1617_v0 = vld [vmem:[%s2025_s2] sm:$0xff]   ;;  %v1618_v1 = vld [vmem:[%s2025_s2 + $0x8] sm:$0xff]   ;;  %v1619_v3 = vld [vmem:[%s2025_s2 + $0x10] sm:$0xff]  }
   0x2   :  { %1503 = vmatprep.subr.bf16.mxu0 %v1617_v0  ;;  %v1620_v2 = vld [vmem:[%s2023_s0] sm:$0xff]   ;;  %v1621_v4 = vld [vmem:[%s2023_s0 + $0x8] sm:$0xff]   ;;  %v1622_v5 = vld [vmem:[%s2023_s0 + $0x10] sm:$0xff]  }
   0x3   :  { %1504 = vmatpush3.bf16.msra.mxu0 %v1617_v0  ;;  %1509 = vmatprep.mubr.msk.bf16.mxu0 %vm173_vm0, %v1620_v2  ;;  %v1623_v6 = vld [vmem:[%s2023_s0 + $0x18] sm:$0xff]   ;;  %v1624_v7 = vld [vmem:[%s2023_s0 + $0x20] sm:$0xff]   ;;  %v1625_v8 = vld [vmem:[%s2023_s0 + $0x28] sm:$0xff]  }
   0x4   :  { %1505 = vmatprep.subr.bf16.mxu0 %v1618_v1  ;;  %v1626_v9 = vld [vmem:[%s2023_s0 + $0x30] sm:$0xff]   ;;  %v1627_v10 = vld [vmem:[%s2023_s0 + $0x38] sm:$0xff]   ;;  %v1628_v11 = vld [vmem:[%s2023_s0 + $0x40] sm:$0xff]  }
   0x7   :  { %1506 = vmatpush3.bf16.msra.mxu0 %v1618_v1 }
   0x8   :  { %1507 = vmatprep.subr.bf16.mxu0 %v1619_v3 }
   0xb   :  { %1508 = vmatpush3.bf16.msra.mxu0 %v1619_v3 }
   0xe   :  { %1510 = vmatmul.mubr.msk.bf16.vlgmr.msra.gmra.mrb[0].mxu0 %vm173_vm0, %v1621_v4 }
   0xf   :  { %1513 = vmatprep.mubr.msk.bf16.mxu0 %vm173_vm0, %v1622_v5 }
  0x16   :  { %1514 = vmatmul.mubr.msk.bf16.gmra.mrb[4].mxu0 %vm173_vm0, %v1623_v6 }
  0x17   :  { %1517 = vmatprep.mubr.msk.bf16.mxu0 %vm173_vm0, %v1624_v7 }
  0x1e   :  { %1518 = vmatmul.mubr.msk.bf16.gmra.mrb[8].mxu0 %vm173_vm0, %v1625_v8 }
  0x1f   :  { %1521 = vmatprep.mubr.msk.bf16.mxu0 %vm173_vm0, %v1626_v9 }
  0x20   :  { %15 = vsyncpa [#allocation3], 0  ;;  %v1629_v12 = vld [vmem:[%s2023_s0 + $0x48] sm:$0xff]   ;;  %v1630_v13 = vld [vmem:[%s2023_s0 + $0x50] sm:$0xff]   ;;  %v1692_v21 = vmov 0.0   ;;  %vm1693_vm1 = vmmov 0   ;;  %v454_v6 = vlaneseq }
  0x21   :  { %v1631_v14 = vld [vmem:[%s2023_s0 + $0x58] sm:$0xff]   ;;  %v1632_v15 = vld [vmem:[%s2023_s0 + $0x60] sm:$0xff]   ;;  %v1633_v16 = vld [vmem:[%s2023_s0 + $0x68] sm:$0xff]   ;;  %1541 = vmatprep.subr.bf16.mxu1 %v1692_v21  ;;  %1581 = vmatprep.subr.bf16.mxu0 %v1692_v21  ;;  %v1694_v4 = vmov 1966171168   ;;  %vm1148_vm2 = vcmask 18432  }
  0x22   :  { %v1634_v17 = vld [vmem:[%s2023_s0 + $0x70] sm:$0xff]   ;;  %v1635_v18 = vld [vmem:[%s2023_s0 + $0x78] sm:$0xff]   ;;  %v1636_v19 = vld [vmem:[%s2026_s3] sm:$0xff]   ;;  %1557 = vmatprep.mubr.msk.bf16.mxu1 %vm1693_vm1, %v1692_v21  ;;  %v452_v5 = vunpack.c.l.s4 %v1694_v4  ;;  %v1893_v8 = vshrl.u32 %v454_v6, 7  ;;  %vm1347_vm3 = vcmask 1042432   ;;  %s1695_s15 = smov [#allocation2]  }
  0x23   :  { %v1637_v20 = vld [vmem:[%s2030_s7] sm:$0xff]   ;;  %1542 = vmatpush3.bf16.msra.mxu1 %v1636_v19  ;;  %v1638_v22 = vld [vmem:[%s2026_s3 + $0x8] sm:$0xff]   ;;  %v1640_v24 = vld [vmem:[%s2026_s3 + $0x10] sm:$0xff]   ;;  %s1382_s16 = sshll.u32 %s1695_s15, 4  ;;  %vm1372_vm4 = vcmask 1041409   ;;  %s1383_s16 = int_to_ptr.vmem [resolvable:$true] %s1382_s16 }
  0x24   :  { %1582 = vmatpush3.bf16.msra.mxu0 %v1637_v20  ;;  %v1639_v23 = vld [vmem:[%s2030_s7 + $0x8] sm:$0xff]   ;;  %1543 = vmatprep.subr.bf16.mxu1 %v1692_v21  ;;  %v1641_v25 = vld [vmem:[%s2030_s7 + $0x10] sm:$0xff]   ;;  %v1642_v34 = vld [vmem:[%s2026_s3 + $0x18] sm:$0xff]   ;;  %v453_v7 = vunpack.c.0.s8 %v452_v5  ;;  %s1668_s17 = scalar_lea.vmem %s1383_s16, 32  ;;  %p1673_p1 = scmp.lt.s32.totalorder %s1383_s16, %s1383_s16 }
  0x25   :  { %1583 = vmatprep.subr.bf16.mxu0 %v1692_v21  ;;  %v1643_v35 = vld [vmem:[%s2030_s7 + $0x18] sm:$0xff]   ;;  %v1644_v48 = vld [vmem:[%s2026_s3 + $0x20] sm:$0xff]   ;;  %v1646_v50 = vld [vmem:[%s2026_s3 + $0x28] sm:$0xff]   ;;  %p1669_p0 = scmp.ne.s32.totalorder %s1383_s16, %s1668_s17  ;;  %p1674_p2 = scmp.lt.s32.totalorder %s1668_s17, %s1668_s17 }
  0x26   :  { %1522 = vmatmul.mubr.msk.bf16.gmra.mrb[12].mxu0 %vm173_vm0, %v1627_v10  ;;  %v1645_v49 = vld [vmem:[%s2030_s7 + $0x20] sm:$0xff]   ;;  %v1647_v52 = vld [vmem:[%s2030_s7 + $0x28] sm:$0xff]   ;;  %v1648_v56 = vld [vmem:[%s2026_s3 + $0x30] sm:$0xff]   ;;  %v1896_v10 = vsub.s32 %v453_v7, %v1893_v8 }
  0x27   :  { %1525 = vmatprep.mubr.msk.bf16.mxu0 %vm173_vm0, %v1628_v11  ;;  %1544 = vmatpush3.bf16.msra.mxu1 %v1638_v22  ;;  %v1649_v57 = vld [vmem:[%s2030_s7 + $0x30] sm:$0xff]   ;;  %v1650_v58 = vld [vmem:[%s2026_s3 + $0x38] sm:$0xff]   ;;  %p1675_p3 = por %p1674_p2, %p1673_p1 }
  0x28   :  { %1584 = vmatpush3.bf16.msra.mxu0 %v1639_v23  ;;  %1545 = vmatprep.subr.bf16.mxu1 %v1692_v21  ;;  %v1651_v59 = vld [vmem:[%s2030_s7 + $0x38] sm:$0xff]  }
  0x29   :  { %1585 = vmatprep.subr.bf16.mxu0 %v1692_v21  ;;  %p1676_p4 = pnand %p1675_p3, %p1669_p0 }
  0x2b   :  { %1546 = vmatpush3.bf16.msra.mxu1 %v1640_v24 }
  0x2c   :  { %1586 = vmatpush3.bf16.msra.mxu0 %v1641_v25  ;;  %1547 = vmatprep.subr.bf16.mxu1 %v1692_v21 }
  0x2d   :  { %1587 = vmatprep.subr.bf16.mxu0 %v1692_v21 }
  0x2e   :  { %1526 = vmatmul.mubr.msk.bf16.gmra.mrb[16].mxu0 %vm173_vm0, %v1629_v12 }
  0x2f   :  { %1529 = vmatprep.mubr.msk.bf16.mxu0 %vm173_vm0, %v1630_v13  ;;  %1548 = vmatpush3.bf16.msra.mxu1 %v1642_v34 }
  0x30   :  { %1588 = vmatpush3.bf16.msra.mxu0 %v1643_v35  ;;  %1549 = vmatprep.subr.bf16.mxu1 %v1692_v21  ;;  %v1652_v35 = vld [vmem:[%s2028_s5] sm:$0xff]  }
  0x31   :  { %1589 = vmatprep.subr.bf16.mxu0 %v1692_v21 }
  0x33   :  { %1550 = vmatpush3.bf16.msra.mxu1 %v1644_v48 }
  0x34   :  { %1590 = vmatpush3.bf16.msra.mxu0 %v1645_v49  ;;  %1551 = vmatprep.subr.bf16.mxu1 %v1692_v21 }
  0x35   :  { %1591 = vmatprep.subr.bf16.mxu0 %v1692_v21 }
  0x36   :  { %1530 = vmatmul.mubr.msk.bf16.gmra.mrb[20].mxu0 %vm173_vm0, %v1631_v14 }
  0x37   :  { %1533 = vmatprep.mubr.msk.bf16.mxu0 %vm173_vm0, %v1632_v15  ;;  %1552 = vmatpush3.bf16.msra.mxu1 %v1646_v50 }
  0x38   :  { %1592 = vmatpush3.bf16.msra.mxu0 %v1647_v52  ;;  %1553 = vmatprep.subr.bf16.mxu1 %v1692_v21  ;;  %v1425_v52 = vld [vmem:[%s2027_s4] ss:$0 sm:$0xff] }
  0x39   :  { %1593 = vmatprep.subr.bf16.mxu0 %v1692_v21 }
  0x3b   :  { %1554 = vmatpush3.bf16.msra.mxu1 %v1648_v56 }
  0x3c   :  { %1594 = vmatpush3.bf16.msra.mxu0 %v1649_v57  ;;  %1555 = vmatprep.subr.bf16.mxu1 %v1692_v21 }
  0x3d   :  { %1595 = vmatprep.subr.bf16.mxu0 %v1692_v21 }
  0x3e   :  { %1534 = vmatmul.mubr.msk.bf16.gmra.mrb[24].mxu0 %vm173_vm0, %v1633_v16 }
  0x3f   :  { %1537 = vmatprep.mubr.msk.bf16.mxu0 %vm173_vm0, %v1634_v17  ;;  %1556 = vmatpush3.bf16.msra.mxu1 %v1650_v58 }
  0x40   :  { %1596 = vmatpush3.bf16.msra.mxu0 %v1651_v59  ;;  %1561 = vmatprep.subr.bf16.mxu1 %v1692_v21 }
  0x46   :  { %1538 = vmatmul.mubr.msk.bf16.gmra.mrb[28].mxu0 %vm173_vm0, %v1635_v18 }
  0x47   :  { %1597 = vmatprep.mubr.msk.bf16.mxu0 %vm1693_vm1, %v1692_v21 }
  0xe1   :  { %v1511_v26 = vpop.f32.mrb[0].mxu0 }
  0xe2   :  { %v256_v27 = vpop.f32.mrb[1].mxu0 }
  0xe3   :  { %383 = vxpose.xlu0.b32.start [1/16] (narrow) %v256_v27, 8  ;;  %v1512_v28 = vpop.f32.mrb[2].mxu0 }
  0xe4   :  { %v259_v29 = vpop.f32.mrb[3].mxu0 }
  0xe7   :  { %384 = vxpose.xlu0.b32.cont [2/16] (narrow) %v259_v29, 8 }
  0xe9   :  { %v1515_v30 = vpop.f32.mrb[4].mxu0 }
  0xea   :  { %v272_v31 = vpop.f32.mrb[5].mxu0 }
  0xeb   :  { %385 = vxpose.xlu0.b32.cont [3/16] (narrow) %v1511_v26, 8  ;;  %v1516_v32 = vpop.f32.mrb[6].mxu0 }
  0xec   :  { %v275_v33 = vpop.f32.mrb[7].mxu0 }
  0xef   :  { %386 = vxpose.xlu0.b32.cont [4/16] (narrow) %v1512_v28, 8 }
  0xf1   :  { %v1519_v36 = vpop.f32.mrb[8].mxu0 }
  0xf2   :  { %v288_v37 = vpop.f32.mrb[9].mxu0 }
  0xf3   :  { %387 = vxpose.xlu0.b32.cont [5/16] (narrow) %v272_v31, 8  ;;  %v1520_v38 = vpop.f32.mrb[10].mxu0 }
  0xf4   :  { %v291_v39 = vpop.f32.mrb[11].mxu0 }
  0xf7   :  { %388 = vxpose.xlu0.b32.cont [6/16] (narrow) %v275_v33, 8 }
  0xf9   :  { %v1523_v40 = vpop.f32.mrb[12].mxu0 }
  0xfa   :  { %v304_v41 = vpop.f32.mrb[13].mxu0 }
  0xfb   :  { %389 = vxpose.xlu0.b32.cont [7/16] (narrow) %v1515_v30, 8  ;;  %v1524_v42 = vpop.f32.mrb[14].mxu0 }
  0xfc   :  { %v307_v43 = vpop.f32.mrb[15].mxu0 }
  0xff   :  { %390 = vxpose.xlu0.b32.cont [8/16] (narrow) %v1516_v32, 8 }
 0x101   :  { %v1527_v44 = vpop.f32.mrb[16].mxu0 }
 0x102   :  { %v320_v45 = vpop.f32.mrb[17].mxu0 }
 0x103   :  { %391 = vxpose.xlu0.b32.cont [9/16] (narrow) %v288_v37, 8  ;;  %415 = vxpose.xlu1.b32.start [1/16] (narrow) %v320_v45, 8  ;;  %v1528_v46 = vpop.f32.mrb[18].mxu0  ;;  %v1653_v37 = vld [vmem:[%s2028_s5 + $0x8] sm:$0xff]  }
 0x104   :  { %v323_v47 = vpop.f32.mrb[19].mxu0 }
 0x107   :  { %392 = vxpose.xlu0.b32.cont [10/16] (narrow) %v291_v39, 8  ;;  %416 = vxpose.xlu1.b32.cont [2/16] (narrow) %v323_v47, 8  ;;  %v1655_v39 = vld [vmem:[%s2028_s5 + $0x18] sm:$0xff]  }
 0x109   :  { %v1531_v51 = vpop.f32.mrb[20].mxu0 }
 0x10a   :  { %v336_v53 = vpop.f32.mrb[21].mxu0 }
 0x10b   :  { %393 = vxpose.xlu0.b32.cont [11/16] (narrow) %v1519_v36, 8  ;;  %417 = vxpose.xlu1.b32.cont [3/16] (narrow) %v1527_v44, 8  ;;  %v1532_v54 = vpop.f32.mrb[22].mxu0 }
 0x10c   :  { %v339_v55 = vpop.f32.mrb[23].mxu0 }
 0x10f   :  { %394 = vxpose.xlu0.b32.cont [12/16] (narrow) %v1520_v38, 8  ;;  %418 = vxpose.xlu1.b32.cont [4/16] (narrow) %v1528_v46, 8  ;;  %v1654_v38 = vld [vmem:[%s2028_s5 + $0x10] sm:$0xff]  }
 0x111   :  { %v1535_v60 = vpop.f32.mrb[24].mxu0 }
 0x112   :  { %v352_v61 = vpop.f32.mrb[25].mxu0 }
 0x113   :  { %395 = vxpose.xlu0.b32.cont [13/16] (narrow) %v304_v41, 8  ;;  %419 = vxpose.xlu1.b32.cont [5/16] (narrow) %v336_v53, 8  ;;  %v1536_v62 = vpop.f32.mrb[26].mxu0  ;;  %v1657_v41 = vld [vmem:[%s2028_s5 + $0x28] sm:$0xff]  }
 0x114   :  { %v355_v63 = vpop.f32.mrb[27].mxu0 }
 0x117   :  { %396 = vxpose.xlu0.b32.cont [14/16] (narrow) %v307_v43, 8  ;;  %420 = vxpose.xlu1.b32.cont [6/16] (narrow) %v339_v55, 8  ;;  %v1659_v43 = vld [vmem:[%s2028_s5 + $0x38] sm:$0xff]   ;;  %v1434_v55 = vld [vmem:[%s2029_s6] ss:$0 sm:$0xff] }
 0x119   :  { %v1539_v0 = vpop.f32.mrb[28].mxu0 }
 0x11a   :  { %v368_v1 = vpop.f32.mrb[29].mxu0 }
 0x11b   :  { %397 = vxpose.xlu0.b32.cont [15/16] (narrow) %v1523_v40, 8  ;;  %421 = vxpose.xlu1.b32.cont [7/16] (narrow) %v1531_v51, 8  ;;  %v1540_v2 = vpop.f32.mrb[30].mxu0  ;;  %v1656_v40 = vld [vmem:[%s2028_s5 + $0x20] sm:$0xff]  }
 0x11c   :  { %v371_v3 = vpop.f32.mrb[31].mxu0 }
 0x11f   :  { %398 = vxpose.xlu0.b32.end [16/16] (narrow) %v1524_v42, 8  ;;  %422 = vxpose.xlu1.b32.cont [8/16] (narrow) %v1532_v54, 8  ;;  %v1658_v42 = vld [vmem:[%s2028_s5 + $0x30] sm:$0xff]  }
 0x123   :  { %423 = vxpose.xlu1.b32.cont [9/16] (narrow) %v352_v61, 8 }
 0x127   :  { %424 = vxpose.xlu1.b32.cont [10/16] (narrow) %v355_v63, 8 }
 0x12b   :  { %425 = vxpose.xlu1.b32.cont [11/16] (narrow) %v1535_v60, 8 }
 0x12f   :  { %426 = vxpose.xlu1.b32.cont [12/16] (narrow) %v1536_v62, 8 }
 0x133   :  { %427 = vxpose.xlu1.b32.cont [13/16] (narrow) %v368_v1, 8 }
 0x137   :  { %428 = vxpose.xlu1.b32.cont [14/16] (narrow) %v371_v3, 8 }
 0x13b   :  { %429 = vxpose.xlu1.b32.cont [15/16] (narrow) %v1539_v0, 8 }
 0x13f   :  { %430 = vxpose.xlu1.b32.end [16/16] (narrow) %v1540_v2, 8 }
 0x163   :  { %v399_v9 = vpop.trf.xlu0 }
 0x164   :  { %v447_v11 = vmul.f32 0.0625, %v399_v9 }
 0x166   :  { %v457_v12 = vrot.slane %v447_v11, %v1896_v10 }
 0x168   :  { %v458_v13 = vcombine.high %v457_v12, %v457_v12  ;;  %v465_v14 = vrot.slane %v457_v12, %v1896_v10 }
 0x16a   :  { %v472_v16 = vrot.slane %v458_v13, %v1896_v10  ;;  %v473_v18 = vcombine.high %v465_v14, %v465_v14 }
 0x16c   :  { %v497_v20 = vcombine.low %v465_v14, %v472_v16 }
 0x16e   :  { %v506_v27 = vrot.slane %v497_v20, %v1896_v10 }
 0x183   :  { %v431_v15 = vpop.trf.xlu1 }
 0x184   :  { %v448_v17 = vmul.f32 0.0625, %v431_v15 }
 0x186   :  { %v480_v19 = vrot.slane %v448_v17, %v1896_v10 }
 0x188   :  { %v481_v22 = vcombine.high %v480_v19, %v480_v19  ;;  %v488_v23 = vrot.slane %v480_v19, %v1896_v10 }
 0x18a   :  { %v495_v24 = vrot.slane %v481_v22, %v1896_v10  ;;  %v496_v25 = vcombine.high %v488_v23, %v488_v23  ;;  %v498_v26 = vcombine.low %v473_v18, %v488_v23 }
 0x18c   :  { %v499_v28 = vcombine.low %v495_v24, %v496_v25  ;;  %v513_v29 = vrot.slane %v498_v26, %v1896_v10 }
 0x18e   :  { %v520_v30 = vrot.slane %v499_v28, %v1896_v10  ;;  %v521_v31 = vcombine.low %v506_v27, %v513_v29 }
 0x190   :  { %v528_v32 = vrot.slane %v521_v31, %v1896_v10  ;;  %v535_v33 = vrot.slane %v520_v30, %v1896_v10 }
 0x192   :  { %v536_v34 = vcombine.low %v528_v32, %v535_v33 }
 0x194   :  { %v538_v36 = vpack.c.bf16 %v536_v34, %v536_v34 }
 0x196   :  { %1558 = vmatmul.mubr.bf16.vlgmr.msra.gmra.mrb[0].mxu1 %v538_v36  ;;  %1598 = vmatmul.mubr.bf16.vlgmr.msra.gmra.mrb[32].mxu0 %v538_v36 }
 0x197   :  { %1562 = vmatpush3.bf16.msra.mxu1 %v1652_v35  ;;  %1577 = vmatprep.mubr.msk.bf16.mxu1 %vm1693_vm1, %v1692_v21 }
 0x198   :  { %1563 = vmatprep.subr.bf16.mxu1 %v1692_v21 }
 0x19b   :  { %1564 = vmatpush3.bf16.msra.mxu1 %v1653_v37 }
 0x19c   :  { %1565 = vmatprep.subr.bf16.mxu1 %v1692_v21 }
 0x19f   :  { %1566 = vmatpush3.bf16.msra.mxu1 %v1654_v38 }
 0x1a0   :  { %1567 = vmatprep.subr.bf16.mxu1 %v1692_v21 }
 0x1a3   :  { %1568 = vmatpush3.bf16.msra.mxu1 %v1655_v39 }
 0x1a4   :  { %1569 = vmatprep.subr.bf16.mxu1 %v1692_v21 }
 0x1a7   :  { %1570 = vmatpush3.bf16.msra.mxu1 %v1656_v40 }
 0x1a8   :  { %1571 = vmatprep.subr.bf16.mxu1 %v1692_v21 }
 0x1ab   :  { %1572 = vmatpush3.bf16.msra.mxu1 %v1657_v41 }
 0x1ac   :  { %1573 = vmatprep.subr.bf16.mxu1 %v1692_v21 }
 0x1af   :  { %1574 = vmatpush3.bf16.msra.mxu1 %v1658_v42 }
 0x1b0   :  { %1575 = vmatprep.subr.bf16.mxu1 %v1692_v21 }
 0x1b3   :  { %1576 = vmatpush3.bf16.msra.mxu1 %v1659_v43 }
 0x1b4   :  { %1601 = vmatprep.subr.bf16.mxu1 %v1692_v21 }
 0x1b6   :  { %1578 = vmatmul.mubr.bf16.vlgmr.msra.gmra.mrb[4].mxu1 %v538_v36 }
 0x1b7   :  { %1603 = vmatprep.mubr.msk.bf16.mxu1 %vm1693_vm1, %v1692_v21 }
 0x269   :  { %v644_v44 = vpop.f32.mrb[0].mxu1  ;;  %v1945_v45 = vpop.f32.mrb[32].mxu0 }
 0x26a   :  { %v1559_v46 = vpop.f32.mrb[1].mxu1  ;;  %v1599_v47 = vpop.f32.mrb[33].mxu0  ;;  %v645_v53 = vadd.f32 %v1425_v52, %v644_v44 }
 0x26b   :  { %v647_v48 = vpop.f32.mrb[2].mxu1  ;;  %v869_v49 = vpop.f32.mrb[34].mxu0 }
 0x26c   :  { %v1560_v50 = vpop.f32.mrb[3].mxu1  ;;  %v1600_v51 = vpop.f32.mrb[35].mxu0  ;;  %v880_v54 = vrot.slane %v645_v53, %v1896_v10  ;;  %v873_v4 = vcombine.high %v645_v53, %v645_v53 }
 0x26e   :  { %v888_v56 = vcombine.high %v880_v54, %v880_v54  ;;  %v896_v5 = vrot.slane %v880_v54, %v1896_v10  ;;  %v887_v15 = vrot.slane %v873_v4, %v1896_v10 }
 0x270   :  { %v910_v0 = vrot.slane %v888_v56, %v1896_v10  ;;  %v918_v16 = vcombine.high %v896_v5, %v896_v5  ;;  %v889_v26 = vcombine.high %v887_v15, %v887_v15  ;;  %v903_v27 = vrot.slane %v887_v15, %v1896_v10 }
 0x272   :  { %v920_v11 = vcombine.low %v896_v5, %v910_v0  ;;  %v919_v22 = vcombine.high %v910_v0, %v910_v0  ;;  %v934_v28 = vrot.slane %v918_v16, %v1896_v10  ;;  %v917_v35 = vrot.slane %v889_v26, %v1896_v10 }
 0x274   :  { %v927_v23 = vrot.slane %v920_v11, %v1896_v10  ;;  %v943_v31 = vcombine.low %v919_v22, %v903_v27  ;;  %v957_v39 = vrot.slane %v917_v35, %v1896_v10 }
 0x276   :  { %v935_v32 = vcombine.low %v927_v23, %v934_v28  ;;  %v950_v36 = vrot.slane %v943_v31, %v1896_v10  ;;  %v1443_v28 = vld [vmem:[%s2031_s8] ss:$0 sm:$0xff] }
 0x278   :  { %v942_v37 = vrot.slane %v935_v32, %v1896_v10  ;;  %v958_v41 = vcombine.low %v950_v36, %v957_v39  ;;  %v1259_v36 = vsub.s32 0, %v1893_v8 }
 0x27a   :  { %v968_v40 = vpack.c.bf16 %v942_v37, %v942_v37  ;;  %v965_v43 = vrot.slane %v958_v41, %v1896_v10  ;;  %v1263_v37 = vsub.s32 1, %v1893_v8 }
 0x27c   :  { %v969_v44 = vpack.c.bf16 %v965_v43, %v965_v43 }
 0x289   :  { %v755_v57 = vpop.f32.mrb[4].mxu1 }
 0x28a   :  { %v756_v58 = vadd.f32 %v1434_v55, %v755_v57  ;;  %v1579_v59 = vpop.f32.mrb[5].mxu1 }
 0x28b   :  { %v758_v60 = vpop.f32.mrb[6].mxu1 }
 0x28c   :  { %v971_v61 = vcombine.high %v756_v58, %v756_v58  ;;  %v978_v62 = vrot.slane %v756_v58, %v1896_v10  ;;  %v1580_v63 = vpop.f32.mrb[7].mxu1 }
 0x28e   :  { %v985_v1 = vrot.slane %v971_v61, %v1896_v10  ;;  %v986_v2 = vcombine.high %v978_v62, %v978_v62  ;;  %v994_v3 = vrot.slane %v978_v62, %v1896_v10 }
 0x290   :  { %v987_v6 = vcombine.high %v985_v1, %v985_v1  ;;  %v1008_v7 = vrot.slane %v986_v2, %v1896_v10  ;;  %v1016_v9 = vcombine.high %v994_v3, %v994_v3  ;;  %v1001_v12 = vrot.slane %v985_v1, %v1896_v10 }
 0x292   :  { %v1017_v13 = vcombine.high %v1008_v7, %v1008_v7  ;;  %v1018_v14 = vcombine.low %v994_v3, %v1008_v7  ;;  %v1015_v17 = vrot.slane %v987_v6, %v1896_v10  ;;  %v1032_v19 = vrot.slane %v1016_v9, %v1896_v10 }
 0x294   :  { %v1025_v18 = vrot.slane %v1018_v14, %v1896_v10  ;;  %v1041_v20 = vcombine.low %v1017_v13, %v1001_v12  ;;  %v1055_v29 = vrot.slane %v1015_v17, %v1896_v10 }
 0x296   :  { %v1048_v24 = vrot.slane %v1041_v20, %v1896_v10  ;;  %v1033_v25 = vcombine.low %v1025_v18, %v1032_v19 }
 0x298   :  { %v1040_v30 = vrot.slane %v1033_v25, %v1896_v10  ;;  %v1056_v34 = vcombine.low %v1048_v24, %v1055_v29  ;;  %v867_v29 = vadd.f32 %v1443_v28, %v1945_v45 }
 0x29a   :  { %v1066_v33 = vpack.c.bf16 %v1040_v30, %v1040_v30  ;;  %v1063_v38 = vrot.slane %v1056_v34, %v1896_v10  ;;  %v1196_v30 = vcombine.high %v867_v29, %v867_v29  ;;  %v1203_v31 = vrot.slane %v867_v29, %v1896_v10 }
 0x29c   :  { %1602 = vmatpush3.bf16.xpose.msra.mxu1 %v1066_v33  ;;  %v1067_v42 = vpack.c.bf16 %v1063_v38, %v1063_v38  ;;  %v1210_v32 = vrot.slane %v1196_v30, %v1896_v10  ;;  %v1211_v33 = vcombine.high %v1203_v31, %v1203_v31  ;;  %v1267_v38 = vsub.s32 2, %v1893_v8 }
 0x29d   :  { %1607 = vmatprep.subr.bf16.mxu1 %v1692_v21 }
 0x29e   :  { %v1212_v34 = vcombine.high %v1210_v32, %v1210_v32  ;;  %v1233_v35 = vrot.slane %v1211_v33, %v1896_v10  ;;  %v1226_v39 = vrot.slane %v1210_v32, %v1896_v10 }
 0x2a0   :  { %v1242_v41 = vcombine.high %v1233_v35, %v1233_v35 }
 0x2a3   :  { %1604 = vmatmul.mubr.bf16.vlgmr.msra.gmra.mrb[8].mxu1 %v968_v40  ;;  %v1240_v40 = vrot.slane %v1212_v34, %v1896_v10 }
 0x2a4   :  { %1608 = vmatpush3.bf16.xpose.msra.mxu1 %v1067_v42  ;;  %1609 = vmatprep.mubr.msk.bf16.mxu1 %vm1693_vm1, %v1692_v21  ;;  %v1452_v21 = vld [vmem:[%s2032_s9] ss:$0 sm:$0xff] }
 0x2ab   :  { %1610 = vmatmul.mubr.bf16.vlgmr.msra.gmra.mrb[12].mxu1 %v969_v44 }
 0x376   :  { %v1102_v46 = vpop.f32.mrb[8].mxu1 }
 0x377   :  { %v1605_v47 = vpop.f32.mrb[9].mxu1  ;;  %v1149_v48 = vsel %vm1148_vm2, %v1102_v46, -inf }
 0x378   :  { %1150 = vmax.xlane.f32.xlu1 %v1149_v48  ;;  %v1105_v49 = vpop.f32.mrb[10].mxu1 }
 0x379   :  { %v1606_v50 = vpop.f32.mrb[11].mxu1 }
 0x37e   :  { %v1142_v51 = vpop.f32.mrb[12].mxu1 }
 0x37f   :  { %v1611_v52 = vpop.f32.mrb[13].mxu1  ;;  %v1152_v53 = vsel %vm1148_vm2, %v1142_v51, -inf }
 0x380   :  { %1153 = vmax.xlane.f32.xlu0 %v1152_v53  ;;  %v1145_v54 = vpop.f32.mrb[14].mxu1 }
 0x381   :  { %v1612_v55 = vpop.f32.mrb[15].mxu1 }
 0x396   :  { %1177 = vbcast.lane.b32.xlu0 %v1452_v21, 256 }
 0x405   :  { %v1151_v56 = vpop.xlane.xlu1 %1150 }
 0x406   :  { %v1155_v57 = vsub.f32 %v1102_v46, %v1151_v56  ;;  %v1219_v46 = vrot.slane %v1203_v31, %v1896_v10 }
 0x408   :  { %v1157_v60 = vmul.f32 1.442695, %v1155_v57  ;;  %v1241_v54 = vcombine.high %v1219_v46, %v1219_v46 }
 0x40d   :  { %v1154_v58 = vpop.xlane.xlu0 %1153 }
 0x40e   :  { %v1156_v59 = vsub.f32 %v1142_v51, %v1154_v58 }
 0x410   :  { %v1159_v61 = vmul.f32 1.442695, %v1156_v59 }
 0x411   :  { %v1178_v5 = vpop.permute.xlu0 %1177 }
 0x412   :  { %1660 = vpow2.f32 %v1159_v61 }
 0x413   :  { %1662 = vpow2.f32 %v1157_v60 }
 0x41c   :  { %v1661_v62 = vpop.eup %1660 }
 0x41d   :  { %v1164_v63 = vsel %vm1148_vm2, %v1661_v62, 0.0  ;;  %v1663_v0 = vpop.eup %1662 }
 0x41e   :  { %1165 = vadd.xlane.f32.xlu1 %v1164_v63  ;;  %v1161_v1 = vsel %vm1148_vm2, %v1663_v0, 0.0 }
 0x422   :  { %1162 = vadd.xlane.f32.xlu1 %v1161_v1 }
 0x4ab   :  { %v1166_v2 = vpop.xlane.xlu1 %1165 }
 0x4ac   :  { %1664 = vrcp.f32 %v1166_v2 }
 0x4af   :  { %v1163_v3 = vpop.xlane.xlu1 %1162 }
 0x4b0   :  { %1666 = vrcp.f32 %v1163_v3 }
 0x4b6   :  { %v1665_v4 = vpop.eup %1664 }
 0x4b7   :  { %v1170_v6 = vmul.f32 %v1665_v4, %v1661_v62 }
 0x4b9   :  { %v1180_v7 = vmul.f32 %v1178_v5, %v1170_v6 }
 0x4ba   :  { %v1667_v9 = vpop.eup %1666 }
 0x4bb   :  { %v1169_v11 = vmul.f32 %v1667_v9, %v1663_v0  ;;  %v1188_v12 = vsel %vm1148_vm2, %v1180_v7, 0.0  ;;  %v1362_v9 = vld [vmem:[%s2024_s1] sm:$0x3] }
 0x4bc   :  { %v1189_v13 = vrot.slane %v1188_v12, 4 }
 0x4bd   :  { %v1179_v14 = vmul.f32 %v1178_v5, %v1169_v11 }
 0x4be   :  { %v1190_v15 = vadd.f32 %v1189_v13, %v1188_v12 }
 0x4bf   :  { %v1181_v16 = vsel %vm1148_vm2, %v1179_v14, 0.0 }
 0x4c0   :  { %v1182_v17 = vrot.slane %v1181_v16, 4  ;;  %v1191_v18 = vrot.slane %v1190_v15, 2 }
 0x4c2   :  { %v1183_v19 = vadd.f32 %v1182_v17, %v1181_v16  ;;  %v1192_v20 = vadd.f32 %v1191_v18, %v1190_v15  ;;  %v1364_v15 = vrot.slane %v1362_v9, 1 }
 0x4c4   :  { %v1193_v22 = vrot.slane %v1192_v20, 1  ;;  %v1184_v23 = vrot.slane %v1183_v19, 2 }
 0x4c6   :  { %v1194_v24 = vadd.f32 %v1193_v22, %v1192_v20  ;;  %v1185_v25 = vadd.f32 %v1184_v23, %v1183_v19 }
 0x4c8   :  { %1253 = vbcast.lane.b32.xlu1 %v1194_v24, 256  ;;  %v1186_v26 = vrot.slane %v1185_v25, 1 }
 0x4ca   :  { %v1187_v27 = vadd.f32 %v1186_v26, %v1185_v25 }
 0x4cc   :  { %1250 = vbcast.lane.b32.xlu1 %v1187_v27, 256 }
 0x53a   :  { %v1254_v45 = vpop.permute.xlu1 %1253 }
 0x53b   :  { %v1272_v42 = vrot.slane %v1254_v45, %v1259_v36  ;;  %v1276_v43 = vrot.slane %v1254_v45, %v1263_v37  ;;  %v1280_v44 = vrot.slane %v1254_v45, %v1267_v38 }
 0x53d   :  { %v1290_v47 = vmul.f32 %v1272_v42, %v1242_v41  ;;  %v1291_v48 = vmul.f32 %v1276_v43, %v1226_v39  ;;  %v1292_v49 = vmul.f32 %v1280_v44, %v1240_v40 }
 0x53e   :  { %v1251_v50 = vpop.permute.xlu1 %1250 }
 0x53f   :  { %v1322_v51 = vcombine.low %v1290_v47, %v1291_v48  ;;  %v1260_v52 = vrot.slane %v1251_v50, %v1259_v36  ;;  %v1264_v53 = vrot.slane %v1251_v50, %v1263_v37  ;;  %v1268_v8 = vrot.slane %v1251_v50, %v1267_v38 }
 0x540   :  { %v1336_v21 = vrot.slane %v1292_v49, %v1896_v10 }
 0x541   :  { %v1329_v55 = vrot.slane %v1322_v51, %v1896_v10  ;;  %v1287_v56 = vmul.f32 %v1260_v52, %v1219_v46  ;;  %v1288_v57 = vmul.f32 %v1264_v53, %v1233_v35  ;;  %v1289_v58 = vmul.f32 %v1268_v8, %v1241_v54 }
 0x543   :  { %v1337_v59 = vcombine.low %v1329_v55, %v1336_v21  ;;  %v1299_v60 = vcombine.low %v1287_v56, %v1288_v57  ;;  %v1313_v63 = vrot.slane %v1289_v58, %v1896_v10 }
 0x545   :  { %v1344_v61 = vrot.slane %v1337_v59, %v1896_v10  ;;  %v1306_v62 = vrot.slane %v1299_v60, %v1896_v10 }
 0x547   :  { %v1355_v0 = vsel %vm1347_vm3, %v1344_v61, 0.0  ;;  %v1314_v1 = vcombine.low %v1306_v62, %v1313_v63 }
 0x548   :  { %v1356_v2 = vrot.slane %v1355_v0, 4 }
 0x549   :  { %v1321_v3 = vrot.slane %v1314_v1, %v1896_v10 }
 0x54a   :  { %v1357_v4 = vadd.f32 %v1356_v2, %v1355_v0 }
 0x54b   :  { %v1348_v5 = vsel %vm1347_vm3, %v1321_v3, 0.0 }
 0x54c   :  { %v1349_v6 = vrot.slane %v1348_v5, 4  ;;  %v1358_v7 = vrot.slane %v1357_v4, 2 }
 0x54e   :  { %v1350_v11 = vadd.f32 %v1349_v6, %v1348_v5  ;;  %v1359_v12 = vadd.f32 %v1358_v7, %v1357_v4 }
 0x550   :  { %v1351_v13 = vrot.slane %v1350_v11, 2  ;;  %v1360_v14 = vrot.slane %v1359_v12, 1 }
 0x552   :  { %v1352_v16 = vadd.f32 %v1351_v13, %v1350_v11  ;;  %v1361_v17 = vadd.f32 %v1360_v14, %v1359_v12 }
 0x554   :  { %v1353_v18 = vrot.slane %v1352_v16, 1  ;;  %v1368_v19 = vadd.f32 %v1364_v15, %v1361_v17 }
 0x556   :  { %v1354_v20 = vadd.f32 %v1353_v18, %v1352_v16  ;;  %v1371_v22 = vrot.slane %v1368_v19, 7 }
 0x558   :  { %v1367_v10 = vadd.f32 %v1362_v9, %v1354_v20 }
 0x55a   :  { %v1373_v23 = vsel %vm1372_vm4, %v1371_v22, %v1367_v10 }
 0x55b   :  { %1375 = vst [vmem:[#allocation2] sm:$0x3] %v1373_v23 }
 0x55c   :  { %1679 = shalt.err (!%p1676_p4)
}
 0x55d   :  { %s1680_s7 = scalar_lea.hbm %s2033_s10, 32 }
 0x55e   :  { %p1681_p5 = scmp.ne.s32.totalorder %s2033_s10, %s1680_s7  ;;  %p1684_p6 = scmp.lt.u32.totalorder %s1680_s7, %s2033_s10 }
 0x560   :  { %p1686_p7 = pnand %p1684_p6, %p1681_p5 }
 0x562   :  { %1689 = shalt.err (!%p1686_p7)
}
 0x563   :  { %1385 = dma.vmem_to_hbm [thread:$0]  %s1383_s16, 32, %s2033_s10, [#allocation3]  }
 0x564   :  { %1690 = dma.done.wait [#allocation3], 32  }
 0x565   :  { %1691 = vsyncadd [#allocation3], 4294967264 }
 0x566   :  { %1389 = vsyncpa [#allocation3], 1 }

</bundles_post_ra>
